<compile_context>
chip_gen: v5e
topology: v5e:2x2
jax: 0.10.0
libtpu: 0.0.40
codegen_flags: <defaults>
</compile_context>

<pallas_src>
from typing import Any, NamedTuple, Optional

import jax
import jax.numpy as jnp
from jax.experimental import pallas as pl
from jax.experimental.pallas import tpu as pltpu


# ----------------------------- constants ------------------------------------

_VMEM_TILE_BUDGET = 14 * 1024 * 1024   # tile/double-buffer budget (fits v5e's 16 MiB)
_VMEM_LIMIT_BYTES = 32 * 1024 * 1024   # explicit scoped-VMEM limit (safe on v5e/v6e/v7x)
_TM_CAP = 512                          # sublane-axis tile cap
_TN_CAP = 512                          # lane-axis tile cap
_AUTO_BF16_MIN_K = 4096                # "auto" compute dtype: bf16 only for big K


# ----------------------------- helpers --------------------------------------

def _round_up(v, m):
    return ((v + m - 1) // m) * m


def _largest_aligned_divisor(dim, cap, align):
    """Largest multiple of `align` that divides `dim` and is <= cap.

    `dim` must itself be a multiple of `align` (so `align` always works)."""
    if dim <= cap:
        return dim
    d = (cap // align) * align
    while d > align:
        if dim % d == 0:
            return d
        d -= align
    return align


def _pick_tk(kp, tm, tn, x_isz, w_isz, out_isz, budget):
    """Largest multiple-of-128 divisor of kp whose tiles fit the VMEM budget.

    Prefers tk == kp (drops the K grid axis entirely)."""
    def cost(tk):
        return (2 * tm * tk * x_isz          # double-buffered x tile
                + 2 * tk * tn * w_isz        # double-buffered W tile
                + 2 * tn * 4                 # bias tile
                + 2 * tm * tn * max(out_isz, 4))  # output tile (+acc headroom)

    if cost(kp) <= budget:
        return kp
    best = 128
    d = 128
    while d < kp:
        if kp % d == 0 and cost(d) <= budget:
            best = d
        d += 128
    return best


def _resolve_compute_dtype(compute_dtype, in_dim):
    if isinstance(compute_dtype, str) and compute_dtype == "auto":
        return jnp.bfloat16 if in_dim >= _AUTO_BF16_MIN_K else None
    return compute_dtype


# ----------------------------- kernels --------------------------------------

def _linear_kernel_single_k(x_ref, w_ref, b_ref, o_ref):
    # x: (tm, K)  w: (K, tn)  b: (1, tn)  o: (tm, tn).  Whole K in one MXU burst.
    acc = jnp.dot(x_ref[...], w_ref[...], preferred_element_type=jnp.float32)
    o_ref[...] = (acc + b_ref[...]).astype(o_ref.dtype)


def _linear_kernel_multi_k_f32(x_ref, w_ref, b_ref, o_ref):
    # Output block is resident across K (index_map ignores k) and is f32:
    # accumulate directly into o_ref -> no scratch, no finalize copy.
    @pl.when(pl.program_id(2) == 0)
    def _():
        o_ref[...] = jnp.broadcast_to(b_ref[...], o_ref.shape)

    o_ref[...] += jnp.dot(x_ref[...], w_ref[...],
                          preferred_element_type=jnp.float32)


def _linear_kernel_multi_k_acc(x_ref, w_ref, b_ref, o_ref, acc_ref):
    # Non-f32 output: accumulate in an f32 VMEM scratch, cast once at finalize.
    k = pl.program_id(2)

    @pl.when(k == 0)
    def _():
        acc_ref[...] = jnp.broadcast_to(b_ref[...], acc_ref.shape)

    acc_ref[...] += jnp.dot(x_ref[...], w_ref[...],
                            preferred_element_type=jnp.float32)

    @pl.when(k == pl.num_programs(2) - 1)
    def _():
        o_ref[...] = acc_ref[...].astype(o_ref.dtype)


# ----------------------------- wrapper --------------------------------------

class LinearParams(NamedTuple):
    """One-time-prepared nn.Linear parameters (hoist out of the per-call path)."""
    w_t: jax.Array            # (kp, np_)  padded, transposed, optionally bf16
    b: jax.Array              # (1, np_)   f32
    out_dim: int
    in_dim: int
    compute_dtype: Any        # resolved dtype (or None = keep input dtype)


def prepare_linear_params(weight, bias, *, compute_dtype="auto") -> LinearParams:
    """Pad/transpose/cast the PyTorch-layout (out_dim, in_dim) weight ONCE.

    compute_dtype: None (keep f32), a dtype (e.g. jnp.bfloat16, recommended on
    v6e/v7x), or "auto" (bf16 only for large K, keeping small-shape accuracy).
    Accumulation / bias / output stay f32 regardless.
    """
    out_dim, in_dim = weight.shape
    compute_dtype = _resolve_compute_dtype(compute_dtype, in_dim)

    np_ = _round_up(out_dim, 128)
    kp = _round_up(in_dim, 128)

    w = weight
    if (out_dim, in_dim) != (np_, kp):
        w = jnp.pad(w, ((0, np_ - out_dim), (0, kp - in_dim)))
    # One-time layout change: (kp, np_) so the kernel uses the standard
    # (tm,tk)x(tk,tn) MXU contraction with no per-step re-orientation.
    w = w.T
    if compute_dtype is not None:
        w = w.astype(compute_dtype)

    b = bias
    if out_dim != np_:
        b = jnp.pad(b, (0, np_ - out_dim))
    b = b.reshape(1, np_).astype(jnp.float32)

    return LinearParams(w, b, out_dim, in_dim, compute_dtype)


def linear_forward(x, params: LinearParams, *,
                   tm: Optional[int] = None,
                   tn: Optional[int] = None,
                   tk: Optional[int] = None):
    """Pallas forward: x @ W.T + b with pre-prepared params.

    x: (batch, in_dim). Returns (batch, out_dim) in x.dtype (accumulation f32).
    tm/tn/tk: optional tile overrides (must divide the 8/128-padded dims).
    """
    batch, in_dim = x.shape
    assert in_dim == params.in_dim, "x feature dim must match the prepared weight"
    out_dim = params.out_dim
    out_dtype = x.dtype

    kp, np_ = params.w_t.shape
    mp = _round_up(batch, 8)

    # Effective compute dtype of the x operand.
    x_dtype = x.dtype
    if params.compute_dtype is not None and x_dtype == jnp.float32:
        x_dtype = params.compute_dtype
    x_isz = jnp.dtype(x_dtype).itemsize
    w_isz = jnp.dtype(params.w_t.dtype).itemsize
    out_isz = jnp.dtype(out_dtype).itemsize

    # ---- tile selection: divisors of the 8/128-aligned dims, VMEM-budgeted ----
    if tm is None:
        tm = _largest_aligned_divisor(mp, _TM_CAP, 8)
    if tn is None:
        tn = _largest_aligned_divisor(np_, _TN_CAP, 128)
    if tk is None:
        tk = _pick_tk(kp, tm, tn, x_isz, w_isz, out_isz, _VMEM_TILE_BUDGET)
    assert mp % tm == 0 and np_ % tn == 0 and kp % tk == 0, (
        "tile sizes must divide the (8,128)-padded dims to keep the "
        "zero-padding guarantee on the reduction")

    # ---- per-call x padding / cast only (weight/bias already prepared) ----
    xp = x
    if (batch, in_dim) != (mp, kp):
        xp = jnp.pad(xp, ((0, mp - batch), (0, kp - in_dim)))
    if xp.dtype != x_dtype:
        xp = xp.astype(x_dtype)

    # ---- grid / specs ----
    has_k_axis = tk < kp
    if not has_k_axis:
        grid = (mp // tm, np_ // tn)
        kernel = _linear_kernel_single_k
        in_specs = [
            pl.BlockSpec((tm, kp), lambda i, j: (i, 0)),   # x strip
            pl.BlockSpec((kp, tn), lambda i, j: (0, j)),   # W strip (pre-transposed)
            pl.BlockSpec((1, tn), lambda i, j: (0, j)),    # bias
        ]
        out_specs = pl.BlockSpec((tm, tn), lambda i, j: (i, j))
        scratch_shapes = []
        dim_sem = ("parallel", "parallel")
    else:
        grid = (mp // tm, np_ // tn, kp // tk)
        in_specs = [
            pl.BlockSpec((tm, tk), lambda i, j, k: (i, k)),
            pl.BlockSpec((tk, tn), lambda i, j, k: (k, j)),
            pl.BlockSpec((1, tn), lambda i, j, k: (0, j)),
        ]
        out_specs = pl.BlockSpec((tm, tn), lambda i, j, k: (i, j))
        dim_sem = ("parallel", "parallel", "arbitrary")
        if out_dtype == jnp.float32:
            kernel = _linear_kernel_multi_k_f32
            scratch_shapes = []
        else:
            kernel = _linear_kernel_multi_k_acc
            scratch_shapes = [pltpu.VMEM((tm, tn), jnp.float32)]
        # NOTE: if profiling ever shows exposed DMA on short K strips, add
        # pipeline_mode=pl.Buffered(3) to the x/W BlockSpecs above.

    # ---- advisory cost estimate (accounts for re-streaming) ----
    n_passes_x = np_ // tn      # x is re-read once per N tile
    n_passes_w = mp // tm       # W is re-read once per M tile
    bytes_accessed = int(
        n_passes_x * mp * kp * x_isz
        + n_passes_w * kp * np_ * w_isz
        + n_passes_w * np_ * 4
        + mp * np_ * out_isz)

    out = pl.pallas_call(
        kernel,
        out_shape=jax.ShapeDtypeStruct((mp, np_), out_dtype),
        grid_spec=pltpu.PrefetchScalarGridSpec(
            num_scalar_prefetch=0,
            grid=grid,
            in_specs=in_specs,
            out_specs=out_specs,
            scratch_shapes=scratch_shapes,
        ),
        compiler_params=pltpu.CompilerParams(
            dimension_semantics=dim_sem,
            vmem_limit_bytes=_VMEM_LIMIT_BYTES),
        cost_estimate=pl.CostEstimate(
            flops=2 * mp * np_ * kp,
            transcendentals=0,
            bytes_accessed=bytes_accessed),
    )(xp, params.w_t, params.b)

    if (mp, np_) != (batch, out_dim):
        out = out[:batch, :out_dim]
    return out


def linear_classifier_forward(x, weight, bias, *, compute_dtype="auto",
                              tm=None, tn=None, tk=None):
    """Convenience one-shot wrapper (API parity with LinearClassifier.forward).

    For repeated calls, hoist `prepare_linear_params` out and call
    `linear_forward` directly so the weight pad/transpose/cast is done once."""
    params = prepare_linear_params(weight, bias, compute_dtype=compute_dtype)
    return linear_forward(x, params, tm=tm, tn=tn, tk=tk)


# ----------------------------- self-test ------------------------------------

if __name__ == "__main__":
    key = jax.random.PRNGKey(0)

    def make_case(case_key, batch, in_dim, out_dim):
        kx, kw, kb = jax.random.split(case_key, 3)
        # Mimic PyTorch nn.Linear default init: U(-1/sqrt(in_dim), 1/sqrt(in_dim)).
        bound = 1.0 / (in_dim ** 0.5)
        weight = jax.random.uniform(kw, (out_dim, in_dim), jnp.float32, -bound, bound)
        bias = jax.random.uniform(kb, (out_dim,), jnp.float32, -bound, bound)
        x = jax.random.normal(kx, (batch, in_dim), jnp.float32)
        return x, weight, bias

    k1, k2 = jax.random.split(key)

    # Case 1: tiny classifier shape -> single-block fast path (grid (1,1), no K axis).
    x, w, b = make_case(k1, batch=8, in_dim=32, out_dim=16)
    out = jax.block_until_ready(linear_classifier_forward(x, w, b))
    ref = x @ w.T + b
    assert out.shape == ref.shape
    assert jnp.allclose(out, ref, atol=1e-5, rtol=1e-5), "mismatch (small case)"

    # Case 2: aligned dims, whole K fits VMEM -> 2-D fully parallel grid,
    # zero tile padding (previously this shape was padded 384x1152x384 -> 512x1536x512).
    x2, w2, b2 = make_case(k2, batch=384, in_dim=1152, out_dim=384)
    params2 = prepare_linear_params(w2, b2)            # hoisted one-time weight prep
    out2 = jax.block_until_ready(linear_forward(x2, params2))
    ref2 = x2 @ w2.T + b2
    assert out2.shape == ref2.shape
    assert jnp.allclose(out2, ref2, atol=1e-4, rtol=1e-4), "mismatch (2-D grid case)"

    # Case 3: force the 3-D grid -> accumulate-into-resident-output (f32) path.
    out3 = jax.block_until_ready(linear_forward(x2, params2, tm=128, tn=128, tk=384))
    assert jnp.allclose(out3, ref2, atol=1e-4, rtol=1e-4), "mismatch (K-axis f32 case)"

    # Case 4: bf16 MXU feed (recommended default on v6e/v7x), f32 accumulation.
    params4 = prepare_linear_params(w2, b2, compute_dtype=jnp.bfloat16)
    out4 = jax.block_until_ready(linear_forward(x2, params4))
    assert jnp.allclose(out4, ref2, atol=5e-2, rtol=5e-2), "mismatch (bf16 compute case)"

    # Case 5: non-f32 activations + K axis -> f32-accumulator-scratch kernel.
    params5 = prepare_linear_params(w2, b2, compute_dtype=jnp.bfloat16)
    out5 = jax.block_until_ready(
        linear_forward(x2.astype(jnp.bfloat16), params5, tm=128, tn=128, tk=384))
    assert out5.dtype == jnp.bfloat16
    assert jnp.allclose(out5.astype(jnp.float32), ref2, atol=1e-1, rtol=1e-1), \
        "mismatch (bf16 output / acc-scratch case)"

    print("KERNEL_OK")
</pallas_src>

<mosaic_0001>
module attributes {stable_mosaic.version = 11 : i64} {
  func.func @_linear_kernel_single_k(%arg0: i32, %arg1: i32, %arg2: memref<8x128xf32, #tpu.memory_space<vmem>>, %arg3: memref<128x128xf32, #tpu.memory_space<vmem>>, %arg4: memref<1x128xf32, #tpu.memory_space<vmem>>, %arg5: memref<8x128xf32, #tpu.memory_space<vmem>>) attributes {dimension_semantics = [#tpu.dimension_semantics<parallel>, #tpu.dimension_semantics<parallel>], iteration_bounds = array<i64: 1, 1>, scalar_prefetch = 0 : i64, scratch_operands = 0 : i64, tpu.core_type = #tpu.core_type<tc>, window_params = [{transform_indices = @transform_0, window_bounds = array<i64: 8, 128>}, {transform_indices = @transform_1, window_bounds = array<i64: 128, 128>}, {transform_indices = @transform_2, window_bounds = array<i64: 1, 128>}, {transform_indices = @transform_3, window_bounds = array<i64: 8, 128>}]} {
    %c0 = arith.constant 0 : index
    %c0_0 = arith.constant 0 : index
    %0 = vector.load %arg2[%c0, %c0_0] : memref<8x128xf32, #tpu.memory_space<vmem>>, vector<8x128xf32>
    %c0_1 = arith.constant 0 : index
    %c0_2 = arith.constant 0 : index
    %1 = vector.load %arg3[%c0_1, %c0_2] : memref<128x128xf32, #tpu.memory_space<vmem>>, vector<128x128xf32>
    %cst = arith.constant dense<0.000000e+00> : vector<8x128xf32>
    %2 = tpu.matmul %0, %1, %cst {dimension_numbers = #tpu.dot_dimension_numbers<[1], [0], [0], [1], [0, 0, 1, 1], [], []>} : vector<8x128xf32>, vector<128x128xf32>, vector<8x128xf32> -> vector<8x128xf32>
    %c0_3 = arith.constant 0 : index
    %c0_4 = arith.constant 0 : index
    %3 = vector.load %arg4[%c0_3, %c0_4] : memref<1x128xf32, #tpu.memory_space<vmem>>, vector<1x128xf32>
    %4 = vector.broadcast %3 : vector<1x128xf32> to vector<8x128xf32>
    %5 = arith.addf %2, %4 : vector<8x128xf32>
    %c0_5 = arith.constant 0 : index
    %c0_6 = arith.constant 0 : index
    %6 = vector.load %arg5[%c0_5, %c0_6] : memref<8x128xf32, #tpu.memory_space<vmem>>, vector<8x128xf32>
    tpu.vector_store %arg5[%c0_5, %c0_6], %5 {strides = array<i32>} : memref<8x128xf32, #tpu.memory_space<vmem>>, vector<8x128xf32>,
    return
  }
  func.func @transform_0(%arg0: i32, %arg1: i32) -> (i32, i32) {
    %c0_i32 = arith.constant 0 : i32
    %c0_i32_0 = arith.constant 0 : i32
    return %arg0, %c0_i32 : i32, i32
  }
  func.func @transform_1(%arg0: i32, %arg1: i32) -> (i32, i32) {
    %c0_i32 = arith.constant 0 : i32
    %c0_i32_0 = arith.constant 0 : i32
    return %c0_i32, %arg1 : i32, i32
  }
  func.func @transform_2(%arg0: i32, %arg1: i32) -> (i32, i32) {
    %c0_i32 = arith.constant 0 : i32
    %c0_i32_0 = arith.constant 0 : i32
    return %c0_i32, %arg1 : i32, i32
  }
  func.func @transform_3(%arg0: i32, %arg1: i32) -> (i32, i32) {
    %c0_i32 = arith.constant 0 : i32
    return %arg0, %arg1 : i32, i32
  }
}

</mosaic_0001>

<bundles_post_ra>
// kernel: tpu_custom_call.1
= control target key start
LH: loop header
LB: loop body
LE: loop exit
PB: predicated region body
PF: predicated region fallthrough
CT: control target
= control target key end

     0   :  { %8 = vsyncpa [#allocation3], 0  ;;  %s226_s0 = inlined_call_operand.hbm [shape: f32[8,128], index: 0, kind: input, shape index: {}]   ;;  %s227_s1 = inlined_call_operand.hbm [shape: f32[128,128], index: 1, kind: input, shape index: {}]   ;;  %s228_s2 = inlined_call_operand.vmem [shape: f32[1,128], index: 2, kind: input, shape index: {}]   ;;  %s229_s3 = inlined_call_operand.hbm [shape: f32[8,128], index: 3, kind: output, shape index: {}]  }
   0x1   :  { %9 = vsyncpa [#allocation6], 0 }
   0x2   :  { %10 = vsyncpa [#allocation4], 0  ;;  %s16_s14 = sshll.u32 %s226_s0, 4  ;;  %s189_s15 = smov [#allocation2]   ;;  %s17_s14 = int_to_ptr.hbm [resolvable:$true] %s16_s14 }
   0x3   :  { %s18_s16 = sshll.u32 %s189_s15, 4  ;;  %s26_s19 = sshll.u32 %s227_s1, 4  ;;  %s19_s16 = int_to_ptr.vmem [resolvable:$true] %s18_s16  ;;  %s27_s19 = int_to_ptr.hbm [resolvable:$true] %s26_s19 }
   0x4   :  { %21 = dma.hbm_to_vmem [thread:$0]  %s17_s14, 128, %s19_s16, [#allocation3]  }
   0x5   :  { %s190_s20 = smov [#allocation5]   ;;  %s191_s22 = smov 128  }
   0x6   :  { %s28_s21 = sshll.u32 %s190_s20, 4  ;;  %s192_s23 = smov 8   ;;  %s29_s21 = int_to_ptr.vmem [resolvable:$true] %s28_s21 }
   0x7   :  { %34 = dma.hbm_to_vmem [thread:$0]  %s27_s19, 2048, %s29_s21, [#allocation6], %s191_s22, %s191_s22, %s192_s23  }
   0x8   :  { %183 = dma.done.wait [#allocation3], 128  }
   0x9   :  { %184 = vsyncadd [#allocation3], 4294967168 }
   0xa   :  { %185 = dma.done.wait [#allocation6], 2048  }
   0xb   :  { %186 = vsyncadd [#allocation6], 4294965248  ;;  %v61_v0 = vld [vmem:[#allocation5 + $0x78] sm:$0xff]  ;;  %v60_v1 = vld [vmem:[#allocation5 + $0x70] sm:$0xff]  ;;  %s193_s24 = smov [#allocation7]   ;;  %s94_s28 = sshll.u32 %s229_s3, 4  ;;  %s95_s28 = int_to_ptr.hbm [resolvable:$true] %s94_s28 }
   0xc   :  { %66 = vmatpush.msra.mxu0 %v61_v0  ;;  %v59_v2 = vld [vmem:[#allocation5 + $0x68] sm:$0xff]  ;;  %v58_v3 = vld [vmem:[#allocation5 + $0x60] sm:$0xff]  ;;  %v57_v4 = vld [vmem:[#allocation5 + $0x58] sm:$0xff]  ;;  %s92_s25 = sshll.u32 %s193_s24, 4  ;;  %s93_s25 = int_to_ptr.vmem [resolvable:$true] %s92_s25 }
   0xd   :  { %v56_v5 = vld [vmem:[#allocation5 + $0x50] sm:$0xff]  ;;  %v55_v6 = vld [vmem:[#allocation5 + $0x48] sm:$0xff]  ;;  %v54_v7 = vld [vmem:[#allocation5 + $0x40] sm:$0xff] }
   0xe   :  { %67 = vmatpush.msra.mxu0 %v60_v1  ;;  %v53_v8 = vld [vmem:[#allocation5 + $0x38] sm:$0xff]  ;;  %v52_v9 = vld [vmem:[#allocation5 + $0x30] sm:$0xff]  ;;  %v51_v10 = vld [vmem:[#allocation5 + $0x28] sm:$0xff] }
   0xf   :  { %v50_v11 = vld [vmem:[#allocation5 + $0x20] sm:$0xff]  ;;  %v49_v12 = vld [vmem:[#allocation5 + $0x18] sm:$0xff]  ;;  %v48_v13 = vld [vmem:[#allocation5 + $0x10] sm:$0xff] }
  0x10   :  { %68 = vmatpush.msra.mxu0 %v59_v2  ;;  %v47_v14 = vld [vmem:[#allocation5 + $0x8] sm:$0xff]  ;;  %v46_v15 = vld [vmem:[#allocation5] sm:$0xff]  ;;  %v45_v16 = vld [vmem:[#allocation2] sm:$0xff] }
  0x11   :  { %v110_v17 = vld [vmem:[%s228_s2] ss:$0 sm:$0xff] }
  0x12   :  { %69 = vmatpush.msra.mxu0 %v58_v3 }
  0x14   :  { %70 = vmatpush.msra.mxu0 %v57_v4 }
  0x16   :  { %71 = vmatpush.msra.mxu0 %v56_v5 }
  0x18   :  { %72 = vmatpush.msra.mxu0 %v55_v6 }
  0x1a   :  { %73 = vmatpush.msra.mxu0 %v54_v7 }
  0x1c   :  { %74 = vmatpush.msra.mxu0 %v53_v8 }
  0x1e   :  { %75 = vmatpush.msra.mxu0 %v52_v9 }
  0x20   :  { %76 = vmatpush.msra.mxu0 %v51_v10 }
  0x22   :  { %77 = vmatpush.msra.mxu0 %v50_v11 }
  0x24   :  { %78 = vmatpush.msra.mxu0 %v49_v12 }
  0x26   :  { %79 = vmatpush.msra.mxu0 %v48_v13 }
  0x28   :  { %80 = vmatpush.msra.mxu0 %v47_v14 }
  0x2a   :  { %81 = vmatpush.msra.mxu0 %v46_v15 }
  0x2b   :  { %82 = vmatmul.f32.vlgmr.msra.gmra.mxu0 %v45_v16 }
  0xa8   :  { %v83_v18 = vpop.f32.mrf.mxu0 }
  0xa9   :  { %v84_v19 = vadd.f32 %v110_v17, %v83_v18 }
  0xab   :  { %86 = vst [vmem:[#allocation7] sm:$0xff] %v84_v19 }
  0xac   :  { %97 = dma.vmem_to_hbm [thread:$0]  %s93_s25, 128, %s95_s28, [#allocation4]  }
  0xad   :  { %187 = dma.done.wait [#allocation4], 128  }
  0xae   :  { %188 = vsyncadd [#allocation4], 4294967168 }
  0xaf   :  { %102 = vsyncpa [#allocation3], 1 }
  0xb0   :  { %103 = vsyncpa [#allocation6], 1 }
  0xb1   :  { %104 = vsyncpa [#allocation4], 1 }

</bundles_post_ra>
